<compile_context>
chip_gen: v7x
topology: tpu7x:2x2x1
jax: 0.10.0
libtpu: 0.0.40
codegen_flags: <defaults>
</compile_context>

<pallas_src>
import functools

import jax
import jax.numpy as jnp
from jax.experimental import pallas as pl
from jax.experimental.pallas import tpu as pltpu


_VMEM_LIMIT = 48 * 1024 * 1024  # > scoped defaults, < v7x 64 MiB physical/TC


# ---------------------------------------------------------------------------
# Pass 1: fused Q/K/V projections (row-tiled; weights resident).
# ---------------------------------------------------------------------------
def _qkv_proj_kernel(x_ref, wq_ref, wk_ref, wv_ref, q_ref, k_ref, v_ref, *,
                     scale: float):
    # x_ref: (tm, E) bf16; wq/wk/wv_ref: (E, E) bf16 (in, out) layout.
    x = x_ref[...]
    q = jnp.dot(x, wq_ref[...], preferred_element_type=jnp.float32)
    k = jnp.dot(x, wk_ref[...], preferred_element_type=jnp.float32)
    v = jnp.dot(x, wv_ref[...], preferred_element_type=jnp.float32)
    # Fold the softmax scale (emb_dim**-0.5, as in the torch module) into q
    # here, before the bf16 downcast: O(T*E) multiplies instead of O(T*T).
    q_ref[...] = (q * scale).astype(q_ref.dtype)
    k_ref[...] = k.astype(k_ref.dtype)
    v_ref[...] = v.astype(v_ref.dtype)


# ---------------------------------------------------------------------------
# Pass 2: per-head attention + concat (scratch) + output projection.
# ---------------------------------------------------------------------------
def _attn_proj_kernel(q_ref, k_ref, v_ref, wp_ref, bp_ref, o_ref, cat_ref, *,
                      n_heads: int, head_size: int):
    # q_ref: (1, tq, E) bf16 (already scaled); k_ref/v_ref: (1, T, E) bf16
    # wp_ref: (E, E) bf16; bp_ref: (1, E) f32; o_ref: (1, tq, E)
    # cat_ref: (tq, E) bf16 VMEM scratch holding concatenated head outputs.
    H = head_size
    q = q_ref[0]                      # (tq, E)
    k = k_ref[0]                      # (T,  E)
    v = v_ref[0]                      # (T,  E)

    for n in range(n_heads):          # static loop; n_heads is small
        lo = n * H
        qh = q[:, lo:lo + H]          # (tq, H) static lane slices
        kh = k[:, lo:lo + H]
        vh = v[:, lo:lo + H]

        # Contract the head dim directly -- no explicit k.T / XLU transpose.
        s = jnp.einsum('qh,kh->qk', qh, kh,
                       preferred_element_type=jnp.float32)        # (tq, T) f32
        # Softmax statistics stay in f32 (important on v5e: no bf16 VPU/EUP).
        m = jnp.max(s, axis=-1, keepdims=True)
        p = jnp.exp(s - m)
        denom = jnp.sum(p, axis=-1, keepdims=True)                # (tq, 1)
        # (attention dropout: identity in eval mode)

        ho = jnp.einsum('qk,kh->qh', p.astype(v.dtype), vh,
                        preferred_element_type=jnp.float32)       # (tq, H) f32
        # Normalize after att@v: O(tq*H) multiplies; approx reciprocal -> EUP.
        ho = ho * pl.reciprocal(denom, approx=True)
        # Write this head at its static column offset; no concatenate and no
        # python list keeping every head's output live simultaneously.
        cat_ref[:, lo:lo + H] = ho.astype(cat_ref.dtype)

    # Output projection: one (tq, E) @ (E, E) matmul with fused bias add.
    y = jnp.dot(cat_ref[...], wp_ref[...],
                preferred_element_type=jnp.float32) + bp_ref[...]
    # (final dropout: identity in eval mode)
    o_ref[0] = y.astype(o_ref.dtype)


def multi_head_att(x, wq, wk, wv, wp, bp, *, n_heads,
                   row_tile: int = 256, q_tile: int = 256):
    """x: (B, T, E); wq/wk/wv/wp: (E, E) in (in, out) layout; bp: (E,).

    Head n of the Q/K/V projections owns columns [n*H, (n+1)*H) of wq/wk/wv
    (the per-head torch weights, transposed and concatenated along the output
    axis). wp is torch proj.weight transposed, so y = cat @ wp + bp.
    """
    B, T, E = x.shape
    assert E % n_heads == 0
    H = E // n_heads
    scale = float(E) ** (-0.5)        # torch module scales by emb_dim

    # bf16 MXU operands; accumulation stays f32 inside the kernels.
    xb = x.reshape(B * T, E).astype(jnp.bfloat16)
    wqb = wq.astype(jnp.bfloat16)
    wkb = wk.astype(jnp.bfloat16)
    wvb = wv.astype(jnp.bfloat16)
    wpb = wp.astype(jnp.bfloat16)
    bp2 = bp.reshape(1, E).astype(jnp.float32)

    # ---- pass 1: Q/K/V projections ---------------------------------------
    BT = B * T
    tm = BT if BT <= row_tile else row_tile       # 256-aligned at real sizes
    grid_a = (pl.cdiv(BT, tm),)

    proj_flops = 2 * BT * E * E * 3
    proj_bytes = 2 * (BT * E + 3 * E * E) + 2 * 3 * BT * E   # bf16 in/out

    qkv = pl.pallas_call(
        functools.partial(_qkv_proj_kernel, scale=scale),
        out_shape=(jax.ShapeDtypeStruct((BT, E), jnp.bfloat16),
                   jax.ShapeDtypeStruct((BT, E), jnp.bfloat16),
                   jax.ShapeDtypeStruct((BT, E), jnp.bfloat16)),
        grid_spec=pltpu.PrefetchScalarGridSpec(
            num_scalar_prefetch=0,
            grid=grid_a,
            in_specs=[
                pl.BlockSpec((tm, E), lambda i: (i, 0)),   # x rows (pipelined)
                pl.BlockSpec((E, E), lambda i: (0, 0)),    # wq (DMA'd once)
                pl.BlockSpec((E, E), lambda i: (0, 0)),    # wk
                pl.BlockSpec((E, E), lambda i: (0, 0)),    # wv
            ],
            out_specs=(pl.BlockSpec((tm, E), lambda i: (i, 0)),
                       pl.BlockSpec((tm, E), lambda i: (i, 0)),
                       pl.BlockSpec((tm, E), lambda i: (i, 0))),
        ),
        compiler_params=pltpu.CompilerParams(
            dimension_semantics=("parallel",),
            vmem_limit_bytes=_VMEM_LIMIT),
        cost_estimate=pl.CostEstimate(
            flops=proj_flops, transcendentals=0, bytes_accessed=proj_bytes),
    )(xb, wqb, wkb, wvb)

    q = qkv[0].reshape(B, T, E)
    k = qkv[1].reshape(B, T, E)
    v = qkv[2].reshape(B, T, E)

    # ---- pass 2: attention + output projection ---------------------------
    tq = T if T <= q_tile else q_tile             # 256-aligned at real sizes
    grid_b = (B, pl.cdiv(T, tq))

    attn_flops = B * n_heads * (2 * T * T * H) * 2 + 2 * BT * E * E
    attn_trans = B * n_heads * T * T
    attn_bytes = 2 * (3 * BT * E + E * E) + 4 * (E + BT * E)

    out = pl.pallas_call(
        functools.partial(_attn_proj_kernel, n_heads=n_heads, head_size=H),
        out_shape=jax.ShapeDtypeStruct((B, T, E), x.dtype),
        grid_spec=pltpu.PrefetchScalarGridSpec(
            num_scalar_prefetch=0,
            grid=grid_b,
            in_specs=[
                pl.BlockSpec((1, tq, E), lambda b, i: (b, i, 0)),  # q tile
                pl.BlockSpec((1, T, E), lambda b, i: (b, 0, 0)),   # k (per batch)
                pl.BlockSpec((1, T, E), lambda b, i: (b, 0, 0)),   # v (per batch)
                pl.BlockSpec((E, E), lambda b, i: (0, 0)),         # wp (resident)
                pl.BlockSpec((1, E), lambda b, i: (0, 0)),         # proj bias
            ],
            out_specs=pl.BlockSpec((1, tq, E), lambda b, i: (b, i, 0)),
            scratch_shapes=[pltpu.VMEM((tq, E), jnp.bfloat16)],    # cat buffer
        ),
        compiler_params=pltpu.CompilerParams(
            dimension_semantics=("parallel", "parallel"),          # both TCs on v7x
            vmem_limit_bytes=_VMEM_LIMIT),
        cost_estimate=pl.CostEstimate(
            flops=attn_flops, transcendentals=attn_trans,
            bytes_accessed=attn_bytes),
    )(q, k, v, wpb, bp2)

    return out


def reference(x, wq, wk, wv, wp, bp, *, n_heads):
    """Pure-JAX f32 reference matching the PyTorch forward (eval mode)."""
    B, T, E = x.shape
    H = E // n_heads
    heads = []
    for n in range(n_heads):
        q = x @ wq[:, n * H:(n + 1) * H]
        k = x @ wk[:, n * H:(n + 1) * H]
        v = x @ wv[:, n * H:(n + 1) * H]
        att = (q @ jnp.swapaxes(k, -2, -1)) * (E ** -0.5)
        att = jax.nn.softmax(att, axis=-1)
        heads.append(att @ v)
    cat = jnp.concatenate(heads, axis=-1)                 # (B, T, E)
    return cat @ wp + bp


if __name__ == "__main__":
    # Small, deterministic config consistent with MultiHeadAtt(emb_dim=32, n_heads=4)
    B, T, E, n_heads = 2, 8, 32, 4
    H = E // n_heads

    key = jax.random.PRNGKey(0)
    kx, kq, kk, kv, kp, kb = jax.random.split(key, 6)

    x = jax.random.normal(kx, (B, T, E), dtype=jnp.float32)
    # Fused head weights, (in=E, out=n_heads*H=E); column block n holds head n.
    wq = jax.random.normal(kq, (E, E), dtype=jnp.float32) * 0.1
    wk = jax.random.normal(kk, (E, E), dtype=jnp.float32) * 0.1
    wv = jax.random.normal(kv, (E, E), dtype=jnp.float32) * 0.1
    # Output projection: torch Linear(E, E) weight transposed to (in=E, out=E).
    wp = jax.random.normal(kp, (E, E), dtype=jnp.float32) * 0.1
    bp = jax.random.normal(kb, (E,), dtype=jnp.float32) * 0.1

    out = multi_head_att(x, wq, wk, wv, wp, bp, n_heads=n_heads)
    out = jax.block_until_ready(out)

    ref = reference(x, wq, wk, wv, wp, bp, n_heads=n_heads)
    assert out.shape == (B, T, E)
    # Tolerance covers bf16 MXU operands (f32 accumulation) and the
    # approximate EUP reciprocal used for the softmax denominator.
    assert jnp.allclose(out, ref, atol=2e-2, rtol=2e-2), "mismatch vs JAX reference"

    print("KERNEL_OK")
</pallas_src>

<mosaic_0001>
module attributes {stable_mosaic.version = 11 : i64} {
  func.func @_qkv_proj_kernel(%arg0: i32, %arg1: memref<16x32xbf16, #tpu.memory_space<vmem>>, %arg2: memref<32x32xbf16, #tpu.memory_space<vmem>>, %arg3: memref<32x32xbf16, #tpu.memory_space<vmem>>, %arg4: memref<32x32xbf16, #tpu.memory_space<vmem>>, %arg5: memref<16x32xbf16, #tpu.memory_space<vmem>>, %arg6: memref<16x32xbf16, #tpu.memory_space<vmem>>, %arg7: memref<16x32xbf16, #tpu.memory_space<vmem>>) attributes {dimension_semantics = [#tpu.dimension_semantics<parallel>], iteration_bounds = array<i64: 1>, scalar_prefetch = 0 : i64, scratch_operands = 0 : i64, tpu.core_type = #tpu.core_type<tc>, window_params = [{transform_indices = @transform_0, window_bounds = array<i64: 16, 32>}, {pipeline_mode = #tpu.pipeline_mode<synchronous>, transform_indices = @transform_1, window_bounds = array<i64: 32, 32>}, {pipeline_mode = #tpu.pipeline_mode<synchronous>, transform_indices = @transform_2, window_bounds = array<i64: 32, 32>}, {pipeline_mode = #tpu.pipeline_mode<synchronous>, transform_indices = @transform_3, window_bounds = array<i64: 32, 32>}, {transform_indices = @transform_4, window_bounds = array<i64: 16, 32>}, {transform_indices = @transform_5, window_bounds = array<i64: 16, 32>}, {transform_indices = @transform_6, window_bounds = array<i64: 16, 32>}]} {
    %c0 = arith.constant 0 : index
    %c0_0 = arith.constant 0 : index
    %0 = vector.load %arg1[%c0, %c0_0] : memref<16x32xbf16, #tpu.memory_space<vmem>>, vector<16x32xbf16>
    %c0_1 = arith.constant 0 : index
    %c0_2 = arith.constant 0 : index
    %1 = vector.load %arg2[%c0_1, %c0_2] : memref<32x32xbf16, #tpu.memory_space<vmem>>, vector<32x32xbf16>
    %cst = arith.constant dense<0.000000e+00> : vector<16x32xf32>
    %2 = tpu.matmul %0, %1, %cst {dimension_numbers = #tpu.dot_dimension_numbers<[1], [0], [0], [1], [0, 0, 1, 1], [], []>} : vector<16x32xbf16>, vector<32x32xbf16>, vector<16x32xf32> -> vector<16x32xf32>
    %c0_3 = arith.constant 0 : index
    %c0_4 = arith.constant 0 : index
    %3 = vector.load %arg3[%c0_3, %c0_4] : memref<32x32xbf16, #tpu.memory_space<vmem>>, vector<32x32xbf16>
    %cst_5 = arith.constant dense<0.000000e+00> : vector<16x32xf32>
    %4 = tpu.matmul %0, %3, %cst_5 {dimension_numbers = #tpu.dot_dimension_numbers<[1], [0], [0], [1], [0, 0, 1, 1], [], []>} : vector<16x32xbf16>, vector<32x32xbf16>, vector<16x32xf32> -> vector<16x32xf32>
    %c0_6 = arith.constant 0 : index
    %c0_7 = arith.constant 0 : index
    %5 = vector.load %arg4[%c0_6, %c0_7] : memref<32x32xbf16, #tpu.memory_space<vmem>>, vector<32x32xbf16>
    %cst_8 = arith.constant dense<0.000000e+00> : vector<16x32xf32>
    %6 = tpu.matmul %0, %5, %cst_8 {dimension_numbers = #tpu.dot_dimension_numbers<[1], [0], [0], [1], [0, 0, 1, 1], [], []>} : vector<16x32xbf16>, vector<32x32xbf16>, vector<16x32xf32> -> vector<16x32xf32>
    %cst_9 = arith.constant 0.176776692 : f32
    %7 = vector.broadcast %cst_9 : f32 to vector<16x32xf32>
    %8 = arith.mulf %2, %7 : vector<16x32xf32>
    %9 = arith.truncf %8 : vector<16x32xf32> to vector<16x32xbf16>
    %c0_10 = arith.constant 0 : index
    %c0_11 = arith.constant 0 : index
    %10 = vector.load %arg5[%c0_10, %c0_11] : memref<16x32xbf16, #tpu.memory_space<vmem>>, vector<16x32xbf16>
    tpu.vector_store %arg5[%c0_10, %c0_11], %9 {strides = array<i32>} : memref<16x32xbf16, #tpu.memory_space<vmem>>, vector<16x32xbf16>,
    %11 = arith.truncf %4 : vector<16x32xf32> to vector<16x32xbf16>
    %c0_12 = arith.constant 0 : index
    %c0_13 = arith.constant 0 : index
    %12 = vector.load %arg6[%c0_12, %c0_13] : memref<16x32xbf16, #tpu.memory_space<vmem>>, vector<16x32xbf16>
    tpu.vector_store %arg6[%c0_12, %c0_13], %11 {strides = array<i32>} : memref<16x32xbf16, #tpu.memory_space<vmem>>, vector<16x32xbf16>,
    %13 = arith.truncf %6 : vector<16x32xf32> to vector<16x32xbf16>
    %c0_14 = arith.constant 0 : index
    %c0_15 = arith.constant 0 : index
    %14 = vector.load %arg7[%c0_14, %c0_15] : memref<16x32xbf16, #tpu.memory_space<vmem>>, vector<16x32xbf16>
    tpu.vector_store %arg7[%c0_14, %c0_15], %13 {strides = array<i32>} : memref<16x32xbf16, #tpu.memory_space<vmem>>, vector<16x32xbf16>,
    return
  }
  func.func @transform_0(%arg0: i32) -> (i32, i32) {
    %c0_i32 = arith.constant 0 : i32
    %c0_i32_0 = arith.constant 0 : i32
    return %arg0, %c0_i32 : i32, i32
  }
  func.func @transform_1(%arg0: i32) -> (i32, i32) {
    %c0_i32 = arith.constant 0 : i32
    %c0_i32_0 = arith.constant 0 : i32
    %c0_i32_1 = arith.constant 0 : i32
    return %c0_i32, %c0_i32_0 : i32, i32
  }
  func.func @transform_2(%arg0: i32) -> (i32, i32) {
    %c0_i32 = arith.constant 0 : i32
    %c0_i32_0 = arith.constant 0 : i32
    %c0_i32_1 = arith.constant 0 : i32
    return %c0_i32, %c0_i32_0 : i32, i32
  }
  func.func @transform_3(%arg0: i32) -> (i32, i32) {
    %c0_i32 = arith.constant 0 : i32
    %c0_i32_0 = arith.constant 0 : i32
    %c0_i32_1 = arith.constant 0 : i32
    return %c0_i32, %c0_i32_0 : i32, i32
  }
  func.func @transform_4(%arg0: i32) -> (i32, i32) {
    %c0_i32 = arith.constant 0 : i32
    %c0_i32_0 = arith.constant 0 : i32
    return %arg0, %c0_i32 : i32, i32
  }
  func.func @transform_5(%arg0: i32) -> (i32, i32) {
    %c0_i32 = arith.constant 0 : i32
    %c0_i32_0 = arith.constant 0 : i32
    return %arg0, %c0_i32 : i32, i32
  }
  func.func @transform_6(%arg0: i32) -> (i32, i32) {
    %c0_i32 = arith.constant 0 : i32
    %c0_i32_0 = arith.constant 0 : i32
    return %arg0, %c0_i32 : i32, i32
  }
}

</mosaic_0001>

<bundles_post_ra>
// kernel: tpu_custom_call.1
= control target key start
LH: loop header
LB: loop body
LE: loop exit
PB: predicated region body
PF: predicated region fallthrough
CT: control target
= control target key end

     0   :  { %12 = vsyncpa [#allocation3], 0  ;;  %s764_s0 = inlined_call_operand.hbm [shape: bf16[16,32], index: 0, kind: input, shape index: {}]   ;;  %s765_s1 = inlined_call_operand.hbm [shape: bf16[32,32], index: 1, kind: input, shape index: {}]   ;;  %s766_s2 = inlined_call_operand.hbm [shape: bf16[32,32], index: 2, kind: input, shape index: {}]   ;;  %s767_s3 = inlined_call_operand.hbm [shape: bf16[32,32], index: 3, kind: input, shape index: {}]   ;;  %s768_s4 = inlined_call_operand.hbm [shape: bf16[16,32], index: 4, kind: output, shape index: {0}]   ;;  %s769_s5 = inlined_call_operand.hbm [shape: bf16[16,32], index: 5, kind: output, shape index: {1}]   ;;  %s770_s6 = inlined_call_operand.hbm [shape: bf16[16,32], index: 6, kind: output, shape index: {2}]  }
   0x1   :  { %13 = vsyncpa [#allocation6], 0 }
   0x2   :  { %14 = vsyncpa [#allocation9], 0 }
   0x3   :  { %15 = vsyncpa [#allocation4], 0 }
   0x4   :  { %16 = vsyncpa [#allocation12], 0  ;;  %s580_s21 = smov [#allocation5]   ;;  %s581_s23 = smov [#allocation2]  }
   0x5   :  { %s34_s22 = sshll.u32 %s580_s21, 4  ;;  %s22_s24 = sshll.u32 %s581_s23, 4  ;;  %s35_s22 = int_to_ptr.vmem [resolvable:$true] %s34_s22  ;;  %s626_s24 = int_to_ptr.vmem [resolvable:$true] %s22_s24 }
   0x6   :  { %s416_s27 = scalar_lea.hbm %s765_s1, 256 }
   0x7   :  { %p417_p0 = scmp.ne.s32.totalorder %s765_s1, %s416_s27  ;;  %p420_p1 = scmp.lt.u32.totalorder %s416_s27, %s765_s1 }
   0x9   :  { %p422_p2 = pnand %p420_p1, %p417_p0 }
   0xb   :  { %425 = shalt.err (!%p422_p2)
}
   0xc   :  { %s426_s8 = scalar_lea.vmem %s35_s22, 256  ;;  %p431_p4 = scmp.lt.s32.totalorder %s35_s22, %s35_s22 }
   0xd   :  { %p427_p3 = scmp.ne.s32.totalorder %s35_s22, %s426_s8  ;;  %p432_p5 = scmp.lt.s32.totalorder %s426_s8, %s426_s8 }
   0xf   :  { %p433_p6 = por %p432_p5, %p431_p4 }
  0x11   :  { %p434_p7 = pnand %p433_p6, %p427_p3 }
  0x13   :  { %437 = shalt.err (!%p434_p7)
}
  0x14   :  { %s582_s9 = smov 64   ;;  %s583_s10 = smov 4  }
  0x15   :  { %40 = dma.hbm_to_vmem [thread:$0]  %s765_s1, 256, %s35_s22, [#allocation6], %s582_s9, %s582_s9, %s583_s10  }
  0x16   :  { %s438_s15 = scalar_lea.hbm %s764_s0, 128 }
  0x17   :  { %p439_p8 = scmp.ne.s32.totalorder %s764_s0, %s438_s15  ;;  %p442_p9 = scmp.lt.u32.totalorder %s438_s15, %s764_s0 }
  0x19   :  { %p444_p10 = pnand %p442_p9, %p439_p8 }
  0x1b   :  { %447 = shalt.err (!%p444_p10)
}
  0x1c   :  { %s448_s20 = scalar_lea.vmem %s626_s24, 128  ;;  %p453_p12 = scmp.lt.s32.totalorder %s626_s24, %s626_s24 }
  0x1d   :  { %p449_p11 = scmp.ne.s32.totalorder %s626_s24, %s448_s20  ;;  %p454_p13 = scmp.lt.s32.totalorder %s448_s20, %s448_s20 }
  0x1f   :  { %p455_p0 = por %p454_p13, %p453_p12 }
  0x21   :  { %p456_p1 = pnand %p455_p0, %p449_p11 }
  0x23   :  { %459 = shalt.err (!%p456_p1)
}
  0x24   :  { %28 = dma.hbm_to_vmem [thread:$0]  %s764_s0, 128, %s626_s24, [#allocation3], %s582_s9, %s582_s9, %s583_s10  }
  0x25   :  { %s584_s22 = smov [#allocation7]   ;;  %s585_s25 = smov [#allocation8]  }
  0x26   :  { %s46_s23 = sshll.u32 %s584_s22, 4  ;;  %s58_s26 = sshll.u32 %s585_s25, 4  ;;  %s47_s23 = int_to_ptr.vmem [resolvable:$true] %s46_s23  ;;  %s663_s26 = int_to_ptr.vmem [resolvable:$true] %s58_s26 }
  0x27   :  { %s460_s29 = scalar_lea.hbm %s766_s2, 256 }
  0x28   :  { %p461_p2 = scmp.ne.s32.totalorder %s766_s2, %s460_s29  ;;  %p464_p3 = scmp.lt.u32.totalorder %s460_s29, %s766_s2 }
  0x2a   :  { %p466_p4 = pnand %p464_p3, %p461_p2 }
  0x2c   :  { %469 = shalt.err (!%p466_p4)
}
  0x2d   :  { %s470_s0 = scalar_lea.vmem %s47_s23, 256  ;;  %p475_p6 = scmp.lt.s32.totalorder %s47_s23, %s47_s23 }
  0x2e   :  { %p471_p5 = scmp.ne.s32.totalorder %s47_s23, %s470_s0  ;;  %p476_p7 = scmp.lt.s32.totalorder %s470_s0, %s470_s0 }
  0x30   :  { %p477_p8 = por %p476_p7, %p475_p6 }
  0x32   :  { %p478_p9 = pnand %p477_p8, %p471_p5 }
  0x34   :  { %481 = shalt.err (!%p478_p9)
}
  0x35   :  { %52 = dma.hbm_to_vmem [thread:$0]  %s766_s2, 256, %s47_s23, [#allocation6], %s582_s9, %s582_s9, %s583_s10  }
  0x36   :  { %s482_s15 = scalar_lea.hbm %s767_s3, 256 }
  0x37   :  { %p483_p10 = scmp.ne.s32.totalorder %s767_s3, %s482_s15  ;;  %p486_p11 = scmp.lt.u32.totalorder %s482_s15, %s767_s3 }
  0x39   :  { %p488_p12 = pnand %p486_p11, %p483_p10 }
  0x3b   :  { %491 = shalt.err (!%p488_p12)
}
  0x3c   :  { %s492_s20 = scalar_lea.vmem %s663_s26, 256  ;;  %p497_p0 = scmp.lt.s32.totalorder %s663_s26, %s663_s26 }
  0x3d   :  { %p493_p13 = scmp.ne.s32.totalorder %s663_s26, %s492_s20  ;;  %p498_p1 = scmp.lt.s32.totalorder %s492_s20, %s492_s20 }
  0x3f   :  { %p499_p2 = por %p498_p1, %p497_p0 }
  0x41   :  { %p500_p3 = pnand %p499_p2, %p493_p13 }
  0x43   :  { %503 = shalt.err (!%p500_p3)
}
  0x44   :  { %64 = dma.hbm_to_vmem [thread:$0]  %s767_s3, 256, %s663_s26, [#allocation9], %s582_s9, %s582_s9, %s583_s10  }
  0x45   :  { %570 = dma.done.wait [#allocation3], 128  }
  0x46   :  { %571 = vsyncadd [#allocation3], 4294967168 }
  0x47   :  { %572 = dma.done.wait [#allocation6], 512  }
  0x48   :  { %573 = vsyncadd [#allocation6], 4294966784 }
  0x49   :  { %574 = dma.done.wait [#allocation9], 256  }
  0x4a   :  { %575 = vsyncadd [#allocation9], 4294967040  ;;  %v586_v0 = vmov 0.0   ;;  %vm587_vm0 = vmmov 0   ;;  %v409_v1 = vld [vmem:[#allocation5] sm:$0xff]   ;;  %v410_v2 = vld [vmem:[#allocation5 + $0x8] sm:$0xff]  }
  0x4b   :  { %374 = vmatprep.subr.bf16.mxu0 %v586_v0  ;;  %382 = vmatprep.subr.bf16.mxu1 %v586_v0  ;;  %v411_v3 = vld [vmem:[#allocation7] sm:$0xff]   ;;  %v412_v4 = vld [vmem:[#allocation2] sm:$0xff]   ;;  %vm101_vm1 = vcmask 261120   ;;  %v413_v6 = vld [vmem:[#allocation8] sm:$0xff]   ;;  %vm270_vm2 = vcmask 257024   ;;  %s588_s3 = smov [#allocation11]  }
  0x4c   :  { %378 = vmatprep.mubr.msk.bf16.mxu0 %vm587_vm0, %v586_v0  ;;  %386 = vmatprep.mubr.msk.bf16.mxu1 %vm587_vm0, %v586_v0  ;;  %v414_v5 = vld [vmem:[#allocation7 + $0x8] sm:$0xff]   ;;  %v415_v7 = vld [vmem:[#allocation8 + $0x8] sm:$0xff]   ;;  %s310_s21 = sshll.u32 %s588_s3, 4  ;;  %s589_s22 = smov [#allocation10]   ;;  %s311_s21 = int_to_ptr.vmem [resolvable:$true] %s310_s21 }
  0x4d   :  { %375 = vmatpush3.bf16.msra.mxu0 %v409_v1  ;;  %383 = vmatpush3.bf16.msra.mxu1 %v411_v3  ;;  %s298_s23 = sshll.u32 %s589_s22, 4  ;;  %s590_s25 = smov [#allocation13]   ;;  %s705_s23 = int_to_ptr.vmem [resolvable:$true] %s298_s23 }
  0x4e   :  { %376 = vmatprep.subr.bf16.mxu0 %v586_v0  ;;  %384 = vmatprep.subr.bf16.mxu1 %v586_v0  ;;  %s709_s26 = sshll.u32 %s590_s25, 4  ;;  %s504_s27 = scalar_lea.vmem %s311_s21, 128  ;;  %s323_s26 = int_to_ptr.vmem [resolvable:$true] %s709_s26 }
  0x4f   :  { %p505_p4 = scmp.ne.s32.totalorder %s311_s21, %s504_s27  ;;  %p509_p5 = scmp.lt.s32.totalorder %s311_s21, %s311_s21 }
  0x50   :  { %p510_p6 = scmp.lt.s32.totalorder %s504_s27, %s504_s27 }
  0x51   :  { %377 = vmatpush3.bf16.msra.mxu0 %v410_v2  ;;  %385 = vmatpush3.bf16.msra.mxu1 %v414_v5 }
  0x52   :  { %390 = vmatprep.subr.bf16.mxu0 %v586_v0  ;;  %p511_p7 = por %p510_p6, %p509_p5 }
  0x54   :  { %379 = vmatmul.mubr.msk.bf16.vlgmr.msra.gmra.mrb[0].mxu0 %vm101_vm1, %v412_v4  ;;  %387 = vmatmul.mubr.msk.bf16.vlgmr.msra.gmra.mrb[0].mxu1 %vm101_vm1, %v412_v4  ;;  %p512_p8 = pnand %p511_p7, %p505_p4 }
  0x55   :  { %391 = vmatpush3.bf16.msra.mxu0 %v413_v6  ;;  %394 = vmatprep.mubr.msk.bf16.mxu0 %vm587_vm0, %v586_v0 }
  0x56   :  { %392 = vmatprep.subr.bf16.mxu0 %v586_v0 }
  0x59   :  { %393 = vmatpush3.bf16.msra.mxu0 %v415_v7 }
  0x5c   :  { %395 = vmatmul.mubr.msk.bf16.vlgmr.msra.gmra.mrb[4].mxu0 %vm101_vm1, %v412_v4 }
 0x127   :  { %v139_v8 = vpop.f32.mrb[0].mxu0  ;;  %v196_v12 = vpop.f32.mrb[0].mxu1 }
 0x128   :  { %v260_v9 = vmul.f32 0.17677669, %v139_v8  ;;  %v380_v10 = vpop.f32.mrb[1].mxu0  ;;  %v361_v16 = vpack.c.bf16 %v196_v12, %v196_v12  ;;  %v388_v17 = vpop.f32.mrb[1].mxu1 }
 0x129   :  { %v142_v11 = vpop.f32.mrb[2].mxu0  ;;  %v199_v18 = vpop.f32.mrb[2].mxu1 }
 0x12a   :  { %v359_v13 = vpack.c.bf16 %v260_v9, %v260_v9  ;;  %v261_v14 = vmul.f32 0.17677669, %v142_v11  ;;  %v381_v15 = vpop.f32.mrb[3].mxu0  ;;  %v362_v20 = vpack.c.bf16 %v199_v18, %v199_v18  ;;  %v389_v21 = vpop.f32.mrb[3].mxu1  ;;  %281 = vst.msk [vmem:[#allocation11] sm:$0xf] %vm270_vm2, %v361_v16 }
 0x12c   :  { %v360_v19 = vpack.c.bf16 %v261_v14, %v261_v14  ;;  %271 = vst.msk [vmem:[#allocation10] sm:$0xf] %vm270_vm2, %v359_v13  ;;  %282 = vst.msk [vmem:[#allocation11 + $0x4] sm:$0xf] %vm270_vm2, %v362_v20 }
 0x12e   :  { %272 = vst.msk [vmem:[#allocation10 + $0x4] sm:$0xf] %vm270_vm2, %v360_v19 }
 0x12f   :  { %v253_v22 = vpop.f32.mrb[4].mxu0 }
 0x130   :  { %515 = shalt.err (!%p512_p8)
}
 0x131   :  { %s516_s30 = scalar_lea.hbm %s769_s5, 128 }
 0x132   :  { %p517_p9 = scmp.ne.s32.totalorder %s769_s5, %s516_s30  ;;  %p520_p10 = scmp.lt.u32.totalorder %s516_s30, %s769_s5 }
 0x134   :  { %p522_p11 = pnand %p520_p10, %p517_p9 }
 0x136   :  { %525 = shalt.err (!%p522_p11)
}
 0x137   :  { %316 = dma.vmem_to_hbm [thread:$0]  %s311_s21, 128, %s769_s5, [#allocation12], %s582_s9, %s582_s9, %s583_s10   ;;  %v363_v23 = vpack.c.bf16 %v253_v22, %v253_v22  ;;  %v396_v24 = vpop.f32.mrb[5].mxu0 }
 0x138   :  { %s526_s13 = scalar_lea.vmem %s705_s23, 128  ;;  %p531_p13 = scmp.lt.s32.totalorder %s705_s23, %s705_s23 }
 0x139   :  { %p527_p12 = scmp.ne.s32.totalorder %s705_s23, %s526_s13  ;;  %p532_p0 = scmp.lt.s32.totalorder %s526_s13, %s526_s13 }
 0x13b   :  { %p533_p1 = por %p532_p0, %p531_p13 }
 0x13d   :  { %p534_p2 = pnand %p533_p1, %p527_p12 }
 0x13f   :  { %537 = shalt.err (!%p534_p2)
}
 0x140   :  { %s538_s16 = scalar_lea.hbm %s768_s4, 128 }
 0x141   :  { %p539_p3 = scmp.ne.s32.totalorder %s768_s4, %s538_s16  ;;  %p542_p4 = scmp.lt.u32.totalorder %s538_s16, %s768_s4 }
 0x143   :  { %p544_p5 = pnand %p542_p4, %p539_p3 }
 0x145   :  { %547 = shalt.err (!%p544_p5)
}
 0x146   :  { %304 = dma.vmem_to_hbm [thread:$0]  %s705_s23, 128, %s768_s4, [#allocation4], %s582_s9, %s582_s9, %s583_s10   ;;  %v256_v25 = vpop.f32.mrb[6].mxu0  ;;  %291 = vst.msk [vmem:[#allocation13] sm:$0xf] %vm270_vm2, %v363_v23 }
 0x147   :  { %v364_v26 = vpack.c.bf16 %v256_v25, %v256_v25  ;;  %v397_v27 = vpop.f32.mrb[7].mxu0  ;;  %s548_s1 = scalar_lea.vmem %s323_s26, 128  ;;  %p553_p7 = scmp.lt.s32.totalorder %s323_s26, %s323_s26 }
 0x148   :  { %p549_p6 = scmp.ne.s32.totalorder %s323_s26, %s548_s1  ;;  %p554_p8 = scmp.lt.s32.totalorder %s548_s1, %s548_s1 }
 0x149   :  { %292 = vst.msk [vmem:[#allocation13 + $0x4] sm:$0xf] %vm270_vm2, %v364_v26 }
 0x14a   :  { %p555_p9 = por %p554_p8, %p553_p7 }
 0x14c   :  { %p556_p10 = pnand %p555_p9, %p549_p6 }
 0x14e   :  { %559 = shalt.err (!%p556_p10)
}
 0x14f   :  { %s560_s22 = scalar_lea.hbm %s770_s6, 128 }
 0x150   :  { %p561_p11 = scmp.ne.s32.totalorder %s770_s6, %s560_s22  ;;  %p564_p12 = scmp.lt.u32.totalorder %s560_s22, %s770_s6 }
 0x152   :  { %p566_p13 = pnand %p564_p12, %p561_p11 }
 0x154   :  { %569 = shalt.err (!%p566_p13)
}
 0x155   :  { %328 = dma.vmem_to_hbm [thread:$0]  %s323_s26, 128, %s770_s6, [#allocation12], %s582_s9, %s582_s9, %s583_s10  }
 0x156   :  { %576 = dma.done.wait [#allocation4], 128  }
 0x157   :  { %577 = vsyncadd [#allocation4], 4294967168 }
 0x158   :  { %578 = dma.done.wait [#allocation12], 256  }
 0x159   :  { %579 = vsyncadd [#allocation12], 4294967040 }
 0x15a   :  { %338 = vsyncpa [#allocation3], 1 }
 0x15b   :  { %339 = vsyncpa [#allocation6], 1 }
 0x15c   :  { %340 = vsyncpa [#allocation9], 1 }
 0x15d   :  { %341 = vsyncpa [#allocation4], 1 }
 0x15e   :  { %342 = vsyncpa [#allocation12], 1 }

</bundles_post_ra>
